<compile_context>
chip_gen: v7x
topology: tpu7x:2x2x1
jax: 0.10.0
libtpu: 0.0.40
codegen_flags: <defaults>
</compile_context>

<pallas_src>
import functools

import jax
import jax.numpy as jnp
from jax.experimental import pallas as pl
from jax.experimental.pallas import tpu as pltpu


def _round_up(v, m):
    return ((v + m - 1) // m) * m


def _cdiv(a, b):
    return -(-a // b)


def _apply_act(h, act_fun):
    if act_fun == "relu":
        return jnp.maximum(h, 0.0)
    if act_fun == "gelu":
        # PyTorch nn.GELU default is the exact erf form (not the tanh approx).
        return jax.nn.gelu(h, approximate=False)
    if act_fun in ("swish", "silu"):
        return h * jax.nn.sigmoid(h)
    raise ValueError(f"unsupported act_fun: {act_fun}")


def _ffn_kernel(x_ref, g_ref, beta_ref, w1_ref, b1_ref, w2_ref, b2_ref,
                o_ref, xn_scr, acc_scr, *, act_fun, eps):
    """One (row-tile, ffn-chunk) grid step.

    grid = (row tiles ["parallel"], dim_ffn chunks ["arbitrary"]).
    LayerNorm runs once per row tile (f == 0) into xn_scr (bf16 MXU LHS);
    each ffn chunk does  acc += act(xn @ w1[:, fc] + b1[fc]) @ w2[fc, :];
    the output is written once on the last chunk.  The (tm, tf) intermediate
    never leaves VMEM.
    """
    f = pl.program_id(1)

    @pl.when(f == 0)
    def _():
        x = x_ref[...].astype(jnp.float32)
        mean = jnp.mean(x, axis=-1, keepdims=True)
        cent = x - mean
        var = jnp.mean(cent * cent, axis=-1, keepdims=True)
        xn = cent * jax.lax.rsqrt(var + eps)
        xn = xn * g_ref[...] + beta_ref[...]
        xn_scr[...] = xn.astype(xn_scr.dtype)
        acc_scr[...] = jnp.zeros_like(acc_scr)

    # Linear1 chunk + activation (bf16 MXU, f32 accumulate; epilogue f32 on VPU/EUP).
    h = jnp.dot(xn_scr[...], w1_ref[...], preferred_element_type=jnp.float32)
    h = _apply_act(h + b1_ref[...], act_fun)
    # TODO(synk): inner nn.Dropout is identity here (eval forward / p=0).

    # Linear2 chunk; cast the LHS to bf16 immediately so the f32 (tm, tf)
    # tensor is not the MXU staging operand.
    acc_scr[...] += jnp.dot(h.astype(w2_ref.dtype), w2_ref[...],
                            preferred_element_type=jnp.float32)

    @pl.when(f == pl.num_programs(1) - 1)
    def _():
        # TODO(synk): outer nn.Dropout is identity here (eval forward / p=0).
        o_ref[...] = (acc_scr[...] + b2_ref[...]).astype(o_ref.dtype)


# Conservative working-set target: fits v7x (64 MiB physical VMEM per TC) with
# headroom; v5e/v6e simply get fully resident weights whenever they fit this.
_VMEM_BUDGET = 40 * 1024 * 1024


def _vmem_bytes(tm, tf, D, n_f, x_bytes, out_bytes, w_bytes):
    nbuf_w = 1 if n_f == 1 else 2          # weight chunks: single-buffer if resident
    b = 2 * tm * D * x_bytes               # x row tile (double-buffered)
    b += 2 * tm * D * out_bytes            # output row tile (double-buffered)
    b += nbuf_w * 2 * D * tf * w_bytes     # w1 + w2 chunks
    b += nbuf_w * tf * 4                   # b1 chunk
    b += 6 * D * 4                         # gamma, beta, b2 (tiny)
    b += tm * D * w_bytes                  # xn scratch (matmul dtype)
    b += tm * D * 4                        # f32 accumulator scratch
    b += tm * tf * (4 + w_bytes)           # (tm, tf) intermediate + bf16 cast
    return b


def _choose_tiles(M, D, F, x_bytes, out_bytes, w_bytes, block_rows, budget):
    # tf candidates: F itself (fully resident weights) or divisors of F that
    # are multiples of 128 (exact chunking -> no ragged garbage columns),
    # largest first.
    tf_cands = [F]
    if F % 128 == 0:
        tf_cands += [c for c in range(F - 128, 0, -128) if F % c == 0]
    # >= 2 row tiles when possible so the "parallel" axis can be split across
    # the two TensorCores of a v7x megacore; tm multiple of 8 sublanes.
    tm = max(8, min(block_rows, _round_up(_cdiv(M, 2), 8)))
    while True:
        for tf in tf_cands:
            n_f = F // tf
            if _vmem_bytes(tm, tf, D, n_f, x_bytes, out_bytes, w_bytes) <= budget:
                return tm, tf, n_f
        if tm <= 8:
            tf = tf_cands[-1]
            return tm, tf, F // tf
        tm = max(8, _round_up(tm // 2, 8))


def feed_forward(x, gamma, beta, w1, b1, w2, b2, *, act_fun="relu", eps=1e-6,
                 block_rows=256, matmul_dtype=jnp.bfloat16):
    """Fused FFN: act(LayerNorm(x) @ w1 + b1) @ w2 + b2.

    x: (..., dim_model); weights stored (in_features, out_features) — the
    transpose of PyTorch nn.Linear.weight; biases are 1-D.
    """
    orig_shape = x.shape
    D = orig_shape[-1]
    F = w1.shape[1]
    assert w1.shape == (D, F) and w2.shape == (F, D)
    assert b1.shape == (F,) and b2.shape == (D,)

    x2 = x.reshape(-1, D)
    M = x2.shape[0]

    # bf16 weights: ~2x MXU throughput, half the weight VMEM/DMA bytes.
    w1c = w1.astype(matmul_dtype)
    w2c = w2.astype(matmul_dtype)
    g2 = gamma.reshape(1, D).astype(jnp.float32)
    be2 = beta.reshape(1, D).astype(jnp.float32)
    b1_2 = b1.reshape(1, F).astype(jnp.float32)
    b2_2 = b2.reshape(1, D).astype(jnp.float32)

    w_bytes = jnp.dtype(matmul_dtype).itemsize
    x_bytes = x2.dtype.itemsize
    out_bytes = x_bytes
    tm, tf, n_f = _choose_tiles(M, D, F, x_bytes, out_bytes, w_bytes,
                                block_rows, _VMEM_BUDGET)
    n_i = _cdiv(M, tm)   # ragged last row tile -> masked writes, no jnp.pad

    est = _vmem_bytes(tm, tf, D, n_f, x_bytes, out_bytes, w_bytes)
    vmem_limit = max(32 << 20,
                     min(int(est * 1.25) + (2 << 20), 56 << 20),
                     int(est * 1.1))

    flops = 4 * M * D * F
    transcend = M * F if act_fun in ("gelu", "swish", "silu") else 0
    bytes_accessed = (x2.size * x_bytes + M * D * out_bytes
                      + (w1c.size + w2c.size) * w_bytes + (F + 3 * D) * 4)

    kernel = functools.partial(_ffn_kernel, act_fun=act_fun, eps=eps)

    def _spec(shape, index_map, buffers, use_pipeline_mode):
        if use_pipeline_mode and buffers is not None:
            try:
                return pl.BlockSpec(shape, index_map,
                                    pipeline_mode=pl.Buffered(buffers))
            except TypeError:  # older JAX without pipeline_mode support
                pass
        return pl.BlockSpec(shape, index_map)

    def _build(use_pipeline_mode):
        # Grid-invariant operands -> single buffer; streamed ffn chunks keep
        # the default double-buffering so weight DMA overlaps the MXU.
        w_buf = 1 if n_f == 1 else None
        in_specs = [
            _spec((tm, D), lambda i, f: (i, 0), None, use_pipeline_mode),   # x
            _spec((1, D), lambda i, f: (0, 0), 1, use_pipeline_mode),       # gamma
            _spec((1, D), lambda i, f: (0, 0), 1, use_pipeline_mode),       # beta
            _spec((D, tf), lambda i, f: (0, f), w_buf, use_pipeline_mode),  # w1
            _spec((1, tf), lambda i, f: (0, f), w_buf, use_pipeline_mode),  # b1
            _spec((tf, D), lambda i, f: (f, 0), w_buf, use_pipeline_mode),  # w2
            _spec((1, D), lambda i, f: (0, 0), 1, use_pipeline_mode),       # b2
        ]
        return pl.pallas_call(
            kernel,
            out_shape=jax.ShapeDtypeStruct((M, D), x.dtype),
            grid_spec=pltpu.PrefetchScalarGridSpec(
                num_scalar_prefetch=0,
                grid=(n_i, n_f),
                in_specs=in_specs,
                out_specs=pl.BlockSpec((tm, D), lambda i, f: (i, 0)),
                scratch_shapes=[pltpu.VMEM((tm, D), matmul_dtype),   # xn
                                pltpu.VMEM((tm, D), jnp.float32)],   # acc
            ),
            compiler_params=pltpu.CompilerParams(
                dimension_semantics=("parallel", "arbitrary"),
                vmem_limit_bytes=vmem_limit,
            ),
            cost_estimate=pl.CostEstimate(flops=flops,
                                          transcendentals=transcend,
                                          bytes_accessed=bytes_accessed),
        )

    args = (x2, g2, be2, w1c, b1_2, w2c, b2_2)
    try:
        out = _build(True)(*args)
    except Exception:  # pragma: no cover — fall back if Buffered(1) unsupported
        out = _build(False)(*args)

    return out.reshape(orig_shape)


class FeedForwardModulePallas:
    """JAX/Pallas equivalent of FeedForwardModule (prenorm=True):
    LayerNorm(eps=1e-6) -> Linear(dim_model, dim_ffn) -> act -> Linear(dim_ffn, dim_model).
    Dropout layers are identity in this (eval) forward implementation."""

    def __init__(self, dim_model, dim_ffn, drop_rate=0.0, act_fun="relu",
                 inner_dropout=True, prenorm=True, key=None):
        assert prenorm, "only the prenorm=True branch is implemented"
        if key is None:
            key = jax.random.PRNGKey(0)
        k1, k2, k3, k4 = jax.random.split(key, 4)
        self.act_fun = act_fun
        self.eps = 1e-6
        # LayerNorm default init.
        self.gamma = jnp.ones((dim_model,), jnp.float32)
        self.beta = jnp.zeros((dim_model,), jnp.float32)
        # nn.Linear default init: U(-1/sqrt(fan_in), 1/sqrt(fan_in)); weights
        # stored transposed (in, out) for the row-major x @ w matmul.
        bnd1 = 1.0 / (dim_model ** 0.5)
        bnd2 = 1.0 / (dim_ffn ** 0.5)
        self.w1 = jax.random.uniform(k1, (dim_model, dim_ffn), jnp.float32, -bnd1, bnd1)
        self.b1 = jax.random.uniform(k2, (dim_ffn,), jnp.float32, -bnd1, bnd1)
        self.w2 = jax.random.uniform(k3, (dim_ffn, dim_model), jnp.float32, -bnd2, bnd2)
        self.b2 = jax.random.uniform(k4, (dim_model,), jnp.float32, -bnd2, bnd2)
        # TODO(synk): custom weight_init/bias_init options of layers.Linear are
        # not replicated; default nn.Linear-style init is used.

    def __call__(self, x):
        return feed_forward(x, self.gamma, self.beta, self.w1, self.b1,
                            self.w2, self.b2, act_fun=self.act_fun, eps=self.eps)


if __name__ == "__main__":
    key = jax.random.PRNGKey(0)
    kx, kp = jax.random.split(key)

    batch, seq, dim_model, dim_ffn = 2, 8, 128, 256
    x = jax.random.normal(kx, (batch, seq, dim_model), jnp.float32)

    ffn = FeedForwardModulePallas(dim_model, dim_ffn, drop_rate=0.0,
                                  act_fun="relu", inner_dropout=True,
                                  prenorm=True, key=kp)
    y = jax.block_until_ready(ffn(x))

    # Plain-JAX f32 reference of the same forward pass.
    mean = x.mean(-1, keepdims=True)
    var = ((x - mean) ** 2).mean(-1, keepdims=True)
    xn = (x - mean) / jnp.sqrt(var + 1e-6) * ffn.gamma + ffn.beta
    h = jnp.maximum(xn @ ffn.w1 + ffn.b1, 0.0)
    ref = h @ ffn.w2 + ffn.b2

    assert y.shape == (batch, seq, dim_model)
    err = float(jnp.max(jnp.abs(y - ref)))
    # Kernel matmuls run in bf16 with f32 accumulation -> loosened tolerance.
    assert jnp.allclose(y, ref, atol=2.5e-2, rtol=2.5e-2), f"max abs err {err}"

    print("KERNEL_OK")
</pallas_src>

<mosaic_0001>
module attributes {stable_mosaic.version = 11 : i64} {
  func.func @_ffn_kernel(%arg0: i32, %arg1: i32, %arg2: memref<8x128xf32, #tpu.memory_space<vmem>>, %arg3: memref<1x128xf32, #tpu.memory_space<vmem>>, %arg4: memref<1x128xf32, #tpu.memory_space<vmem>>, %arg5: memref<128x256xbf16, #tpu.memory_space<vmem>>, %arg6: memref<1x256xf32, #tpu.memory_space<vmem>>, %arg7: memref<256x128xbf16, #tpu.memory_space<vmem>>, %arg8: memref<1x128xf32, #tpu.memory_space<vmem>>, %arg9: memref<8x128xf32, #tpu.memory_space<vmem>>, %arg10: memref<8x128xbf16, #tpu.memory_space<vmem>>, %arg11: memref<8x128xf32, #tpu.memory_space<vmem>>) attributes {dimension_semantics = [#tpu.dimension_semantics<parallel>, #tpu.dimension_semantics<arbitrary>], iteration_bounds = array<i64: 2, 1>, scalar_prefetch = 0 : i64, scratch_operands = 2 : i64, tpu.core_type = #tpu.core_type<tc>, window_params = [{transform_indices = @transform_0, window_bounds = array<i64: 8, 128>}, {pipeline_mode = #tpu.pipeline_mode<synchronous>, transform_indices = @transform_1, window_bounds = array<i64: 1, 128>}, {pipeline_mode = #tpu.pipeline_mode<synchronous>, transform_indices = @transform_2, window_bounds = array<i64: 1, 128>}, {pipeline_mode = #tpu.pipeline_mode<synchronous>, transform_indices = @transform_3, window_bounds = array<i64: 128, 256>}, {pipeline_mode = #tpu.pipeline_mode<synchronous>, transform_indices = @transform_4, window_bounds = array<i64: 1, 256>}, {pipeline_mode = #tpu.pipeline_mode<synchronous>, transform_indices = @transform_5, window_bounds = array<i64: 256, 128>}, {pipeline_mode = #tpu.pipeline_mode<synchronous>, transform_indices = @transform_6, window_bounds = array<i64: 1, 128>}, {transform_indices = @transform_7, window_bounds = array<i64: 8, 128>}]} {
    %c0_i32 = arith.constant 0 : i32
    %0 = arith.cmpi eq, %arg1, %c0_i32 : i32
    %1 = arith.extui %0 : i1 to i32
    %c0_i32_0 = arith.constant 0 : i32
    %2 = arith.cmpi ne, %1, %c0_i32_0 : i32
    scf.if %2 {
      %c0_16 = arith.constant 0 : index
      %c0_17 = arith.constant 0 : index
      %20 = vector.load %arg2[%c0_16, %c0_17] : memref<8x128xf32, #tpu.memory_space<vmem>>, vector<8x128xf32>
      %cst_18 = arith.constant dense<0.000000e+00> : vector<8xf32>
      %21 = vector.multi_reduction <add>, %20, %cst_18 [1] : vector<8x128xf32> to vector<8xf32>
      %22 = vector.shape_cast %21 : vector<8xf32> to vector<8x1xf32>
      %cst_19 = arith.constant 1.280000e+02 : f32
      %23 = vector.broadcast %cst_19 : f32 to vector<8x1xf32>
      %24 = arith.divf %22, %23 : vector<8x1xf32>
      %25 = vector.broadcast %24 : vector<8x1xf32> to vector<8x128xf32>
      %26 = arith.subf %20, %25 : vector<8x128xf32>
      %27 = arith.mulf %26, %26 : vector<8x128xf32>
      %cst_20 = arith.constant dense<0.000000e+00> : vector<8xf32>
      %28 = vector.multi_reduction <add>, %27, %cst_20 [1] : vector<8x128xf32> to vector<8xf32>
      %29 = vector.shape_cast %28 : vector<8xf32> to vector<8x1xf32>
      %cst_21 = arith.constant 1.280000e+02 : f32
      %30 = vector.broadcast %cst_21 : f32 to vector<8x1xf32>
      %31 = arith.divf %29, %30 : vector<8x1xf32>
      %cst_22 = arith.constant 9.99999997E-7 : f32
      %32 = vector.broadcast %cst_22 : f32 to vector<8x1xf32>
      %33 = arith.addf %31, %32 : vector<8x1xf32>
      %34 = math.rsqrt %33 : vector<8x1xf32>
      %35 = vector.broadcast %34 : vector<8x1xf32> to vector<8x128xf32>
      %36 = arith.mulf %26, %35 : vector<8x128xf32>
      %c0_23 = arith.constant 0 : index
      %c0_24 = arith.constant 0 : index
      %37 = vector.load %arg3[%c0_23, %c0_24] : memref<1x128xf32, #tpu.memory_space<vmem>>, vector<1x128xf32>
      %38 = vector.broadcast %37 : vector<1x128xf32> to vector<8x128xf32>
      %39 = arith.mulf %36, %38 : vector<8x128xf32>
      %c0_25 = arith.constant 0 : index
      %c0_26 = arith.constant 0 : index
      %40 = vector.load %arg4[%c0_25, %c0_26] : memref<1x128xf32, #tpu.memory_space<vmem>>, vector<1x128xf32>
      %41 = vector.broadcast %40 : vector<1x128xf32> to vector<8x128xf32>
      %42 = arith.addf %39, %41 : vector<8x128xf32>
      %43 = arith.truncf %42 : vector<8x128xf32> to vector<8x128xbf16>
      %c0_27 = arith.constant 0 : index
      %c0_28 = arith.constant 0 : index
      %44 = vector.load %arg10[%c0_27, %c0_28] : memref<8x128xbf16, #tpu.memory_space<vmem>>, vector<8x128xbf16>
      tpu.vector_store %arg10[%c0_27, %c0_28], %43 {strides = array<i32>} : memref<8x128xbf16, #tpu.memory_space<vmem>>, vector<8x128xbf16>,
      %cst_29 = arith.constant 0.000000e+00 : f32
      %45 = vector.broadcast %cst_29 : f32 to vector<8x128xf32>
      %c0_30 = arith.constant 0 : index
      %c0_31 = arith.constant 0 : index
      %46 = vector.load %arg11[%c0_30, %c0_31] : memref<8x128xf32, #tpu.memory_space<vmem>>, vector<8x128xf32>
      tpu.vector_store %arg11[%c0_30, %c0_31], %45 {strides = array<i32>} : memref<8x128xf32, #tpu.memory_space<vmem>>, vector<8x128xf32>,
    } else {
    }
    %c0 = arith.constant 0 : index
    %c0_1 = arith.constant 0 : index
    %3 = vector.load %arg10[%c0, %c0_1] : memref<8x128xbf16, #tpu.memory_space<vmem>>, vector<8x128xbf16>
    %c0_2 = arith.constant 0 : index
    %c0_3 = arith.constant 0 : index
    %4 = vector.load %arg5[%c0_2, %c0_3] : memref<128x256xbf16, #tpu.memory_space<vmem>>, vector<128x256xbf16>
    %cst = arith.constant dense<0.000000e+00> : vector<8x256xf32>
    %5 = tpu.matmul %3, %4, %cst {dimension_numbers = #tpu.dot_dimension_numbers<[1], [0], [0], [1], [0, 0, 1, 1], [], []>} : vector<8x128xbf16>, vector<128x256xbf16>, vector<8x256xf32> -> vector<8x256xf32>
    %c0_4 = arith.constant 0 : index
    %c0_5 = arith.constant 0 : index
    %6 = vector.load %arg6[%c0_4, %c0_5] : memref<1x256xf32, #tpu.memory_space<vmem>>, vector<1x256xf32>
    %7 = vector.broadcast %6 : vector<1x256xf32> to vector<8x256xf32>
    %8 = arith.addf %5, %7 : vector<8x256xf32>
    %cst_6 = arith.constant 0.000000e+00 : f32
    %9 = vector.broadcast %cst_6 : f32 to vector<8x256xf32>
    %10 = arith.maximumf %8, %9 : vector<8x256xf32>
    %c0_7 = arith.constant 0 : index
    %c0_8 = arith.constant 0 : index
    %11 = vector.load %arg11[%c0_7, %c0_8] : memref<8x128xf32, #tpu.memory_space<vmem>>, vector<8x128xf32>
    %12 = arith.truncf %10 : vector<8x256xf32> to vector<8x256xbf16>
    %c0_9 = arith.constant 0 : index
    %c0_10 = arith.constant 0 : index
    %13 = vector.load %arg7[%c0_9, %c0_10] : memref<256x128xbf16, #tpu.memory_space<vmem>>, vector<256x128xbf16>
    %cst_11 = arith.constant dense<0.000000e+00> : vector<8x128xf32>
    %14 = tpu.matmul %12, %13, %cst_11 {dimension_numbers = #tpu.dot_dimension_numbers<[1], [0], [0], [1], [0, 0, 1, 1], [], []>} : vector<8x256xbf16>, vector<256x128xbf16>, vector<8x128xf32> -> vector<8x128xf32>
    %15 = arith.addf %11, %14 : vector<8x128xf32>
    %c0_12 = arith.constant 0 : index
    %c0_13 = arith.constant 0 : index
    %16 = vector.load %arg11[%c0_12, %c0_13] : memref<8x128xf32, #tpu.memory_space<vmem>>, vector<8x128xf32>
    tpu.vector_store %arg11[%c0_12, %c0_13], %15 {strides = array<i32>} : memref<8x128xf32, #tpu.memory_space<vmem>>, vector<8x128xf32>,
    %c0_i32_14 = arith.constant 0 : i32
    %17 = arith.cmpi eq, %arg1, %c0_i32_14 : i32
    %18 = arith.extui %17 : i1 to i32
    %c0_i32_15 = arith.constant 0 : i32
    %19 = arith.cmpi ne, %18, %c0_i32_15 : i32
    scf.if %19 {
      %c0_16 = arith.constant 0 : index
      %c0_17 = arith.constant 0 : index
      %20 = vector.load %arg11[%c0_16, %c0_17] : memref<8x128xf32, #tpu.memory_space<vmem>>, vector<8x128xf32>
      %c0_18 = arith.constant 0 : index
      %c0_19 = arith.constant 0 : index
      %21 = vector.load %arg8[%c0_18, %c0_19] : memref<1x128xf32, #tpu.memory_space<vmem>>, vector<1x128xf32>
      %22 = vector.broadcast %21 : vector<1x128xf32> to vector<8x128xf32>
      %23 = arith.addf %20, %22 : vector<8x128xf32>
      %c0_20 = arith.constant 0 : index
      %c0_21 = arith.constant 0 : index
      %24 = vector.load %arg9[%c0_20, %c0_21] : memref<8x128xf32, #tpu.memory_space<vmem>>, vector<8x128xf32>
      tpu.vector_store %arg9[%c0_20, %c0_21], %23 {strides = array<i32>} : memref<8x128xf32, #tpu.memory_space<vmem>>, vector<8x128xf32>,
    } else {
    }
    return
  }
  func.func @transform_0(%arg0: i32, %arg1: i32) -> (i32, i32) {
    %c0_i32 = arith.constant 0 : i32
    %c0_i32_0 = arith.constant 0 : i32
    return %arg0, %c0_i32 : i32, i32
  }
  func.func @transform_1(%arg0: i32, %arg1: i32) -> (i32, i32) {
    %c0_i32 = arith.constant 0 : i32
    %c0_i32_0 = arith.constant 0 : i32
    %c0_i32_1 = arith.constant 0 : i32
    return %c0_i32, %c0_i32_0 : i32, i32
  }
  func.func @transform_2(%arg0: i32, %arg1: i32) -> (i32, i32) {
    %c0_i32 = arith.constant 0 : i32
    %c0_i32_0 = arith.constant 0 : i32
    %c0_i32_1 = arith.constant 0 : i32
    return %c0_i32, %c0_i32_0 : i32, i32
  }
  func.func @transform_3(%arg0: i32, %arg1: i32) -> (i32, i32) {
    %c0_i32 = arith.constant 0 : i32
    %c0_i32_0 = arith.constant 0 : i32
    return %c0_i32, %arg1 : i32, i32
  }
  func.func @transform_4(%arg0: i32, %arg1: i32) -> (i32, i32) {
    %c0_i32 = arith.constant 0 : i32
    %c0_i32_0 = arith.constant 0 : i32
    return %c0_i32, %arg1 : i32, i32
  }
  func.func @transform_5(%arg0: i32, %arg1: i32) -> (i32, i32) {
    %c0_i32 = arith.constant 0 : i32
    %c0_i32_0 = arith.constant 0 : i32
    return %arg1, %c0_i32 : i32, i32
  }
  func.func @transform_6(%arg0: i32, %arg1: i32) -> (i32, i32) {
    %c0_i32 = arith.constant 0 : i32
    %c0_i32_0 = arith.constant 0 : i32
    %c0_i32_1 = arith.constant 0 : i32
    return %c0_i32, %c0_i32_0 : i32, i32
  }
  func.func @transform_7(%arg0: i32, %arg1: i32) -> (i32, i32) {
    %c0_i32 = arith.constant 0 : i32
    %c0_i32_0 = arith.constant 0 : i32
    return %arg0, %c0_i32 : i32, i32
  }
}

module attributes {stable_mosaic.version = 11 : i64} {
  func.func @_ffn_kernel(%arg0: i32, %arg1: i32, %arg2: memref<8x128xf32, #tpu.memory_space<vmem>>, %arg3: memref<1x128xf32, #tpu.memory_space<vmem>>, %arg4: memref<1x128xf32, #tpu.memory_space<vmem>>, %arg5: memref<128x256xbf16, #tpu.memory_space<vmem>>, %arg6: memref<1x256xf32, #tpu.memory_space<vmem>>, %arg7: memref<256x128xbf16, #tpu.memory_space<vmem>>, %arg8: memref<1x128xf32, #tpu.memory_space<vmem>>, %arg9: memref<8x128xf32, #tpu.memory_space<vmem>>, %arg10: memref<8x128xbf16, #tpu.memory_space<vmem>>, %arg11: memref<8x128xf32, #tpu.memory_space<vmem>>) attributes {dimension_semantics = [#tpu.dimension_semantics<parallel>, #tpu.dimension_semantics<arbitrary>], iteration_bounds = array<i64: 2, 1>, scalar_prefetch = 0 : i64, scratch_operands = 2 : i64, tpu.core_type = #tpu.core_type<tc>, window_params = [{transform_indices = @transform_0, window_bounds = array<i64: 8, 128>}, {pipeline_mode = #tpu.pipeline_mode<synchronous>, transform_indices = @transform_1, window_bounds = array<i64: 1, 128>}, {pipeline_mode = #tpu.pipeline_mode<synchronous>, transform_indices = @transform_2, window_bounds = array<i64: 1, 128>}, {transform_indices = @transform_3, window_bounds = array<i64: 128, 256>}, {transform_indices = @transform_4, window_bounds = array<i64: 1, 256>}, {transform_indices = @transform_5, window_bounds = array<i64: 256, 128>}, {pipeline_mode = #tpu.pipeline_mode<synchronous>, transform_indices = @transform_6, window_bounds = array<i64: 1, 128>}, {transform_indices = @transform_7, window_bounds = array<i64: 8, 128>}]} {
    %c0_i32 = arith.constant 0 : i32
    %0 = arith.cmpi eq, %arg1, %c0_i32 : i32
    %1 = arith.extui %0 : i1 to i32
    %c0_i32_0 = arith.constant 0 : i32
    %2 = arith.cmpi ne, %1, %c0_i32_0 : i32
    scf.if %2 {
      %c0_16 = arith.constant 0 : index
      %c0_17 = arith.constant 0 : index
      %20 = vector.load %arg2[%c0_16, %c0_17] : memref<8x128xf32, #tpu.memory_space<vmem>>, vector<8x128xf32>
      %cst_18 = arith.constant dense<0.000000e+00> : vector<8xf32>
      %21 = vector.multi_reduction <add>, %20, %cst_18 [1] : vector<8x128xf32> to vector<8xf32>
      %22 = vector.shape_cast %21 : vector<8xf32> to vector<8x1xf32>
      %cst_19 = arith.constant 1.280000e+02 : f32
      %23 = vector.broadcast %cst_19 : f32 to vector<8x1xf32>
      %24 = arith.divf %22, %23 : vector<8x1xf32>
      %25 = vector.broadcast %24 : vector<8x1xf32> to vector<8x128xf32>
      %26 = arith.subf %20, %25 : vector<8x128xf32>
      %27 = arith.mulf %26, %26 : vector<8x128xf32>
      %cst_20 = arith.constant dense<0.000000e+00> : vector<8xf32>
      %28 = vector.multi_reduction <add>, %27, %cst_20 [1] : vector<8x128xf32> to vector<8xf32>
      %29 = vector.shape_cast %28 : vector<8xf32> to vector<8x1xf32>
      %cst_21 = arith.constant 1.280000e+02 : f32
      %30 = vector.broadcast %cst_21 : f32 to vector<8x1xf32>
      %31 = arith.divf %29, %30 : vector<8x1xf32>
      %cst_22 = arith.constant 9.99999997E-7 : f32
      %32 = vector.broadcast %cst_22 : f32 to vector<8x1xf32>
      %33 = arith.addf %31, %32 : vector<8x1xf32>
      %34 = math.rsqrt %33 : vector<8x1xf32>
      %35 = vector.broadcast %34 : vector<8x1xf32> to vector<8x128xf32>
      %36 = arith.mulf %26, %35 : vector<8x128xf32>
      %c0_23 = arith.constant 0 : index
      %c0_24 = arith.constant 0 : index
      %37 = vector.load %arg3[%c0_23, %c0_24] : memref<1x128xf32, #tpu.memory_space<vmem>>, vector<1x128xf32>
      %38 = vector.broadcast %37 : vector<1x128xf32> to vector<8x128xf32>
      %39 = arith.mulf %36, %38 : vector<8x128xf32>
      %c0_25 = arith.constant 0 : index
      %c0_26 = arith.constant 0 : index
      %40 = vector.load %arg4[%c0_25, %c0_26] : memref<1x128xf32, #tpu.memory_space<vmem>>, vector<1x128xf32>
      %41 = vector.broadcast %40 : vector<1x128xf32> to vector<8x128xf32>
      %42 = arith.addf %39, %41 : vector<8x128xf32>
      %43 = arith.truncf %42 : vector<8x128xf32> to vector<8x128xbf16>
      %c0_27 = arith.constant 0 : index
      %c0_28 = arith.constant 0 : index
      %44 = vector.load %arg10[%c0_27, %c0_28] : memref<8x128xbf16, #tpu.memory_space<vmem>>, vector<8x128xbf16>
      tpu.vector_store %arg10[%c0_27, %c0_28], %43 {strides = array<i32>} : memref<8x128xbf16, #tpu.memory_space<vmem>>, vector<8x128xbf16>,
      %cst_29 = arith.constant 0.000000e+00 : f32
      %45 = vector.broadcast %cst_29 : f32 to vector<8x128xf32>
      %c0_30 = arith.constant 0 : index
      %c0_31 = arith.constant 0 : index
      %46 = vector.load %arg11[%c0_30, %c0_31] : memref<8x128xf32, #tpu.memory_space<vmem>>, vector<8x128xf32>
      tpu.vector_store %arg11[%c0_30, %c0_31], %45 {strides = array<i32>} : memref<8x128xf32, #tpu.memory_space<vmem>>, vector<8x128xf32>,
    } else {
    }
    %c0 = arith.constant 0 : index
    %c0_1 = arith.constant 0 : index
    %3 = vector.load %arg10[%c0, %c0_1] : memref<8x128xbf16, #tpu.memory_space<vmem>>, vector<8x128xbf16>
    %c0_2 = arith.constant 0 : index
    %c0_3 = arith.constant 0 : index
    %4 = vector.load %arg5[%c0_2, %c0_3] : memref<128x256xbf16, #tpu.memory_space<vmem>>, vector<128x256xbf16>
    %cst = arith.constant dense<0.000000e+00> : vector<8x256xf32>
    %5 = tpu.matmul %3, %4, %cst {dimension_numbers = #tpu.dot_dimension_numbers<[1], [0], [0], [1], [0, 0, 1, 1], [], []>} : vector<8x128xbf16>, vector<128x256xbf16>, vector<8x256xf32> -> vector<8x256xf32>
    %c0_4 = arith.constant 0 : index
    %c0_5 = arith.constant 0 : index
    %6 = vector.load %arg6[%c0_4, %c0_5] : memref<1x256xf32, #tpu.memory_space<vmem>>, vector<1x256xf32>
    %7 = vector.broadcast %6 : vector<1x256xf32> to vector<8x256xf32>
    %8 = arith.addf %5, %7 : vector<8x256xf32>
    %cst_6 = arith.constant 0.000000e+00 : f32
    %9 = vector.broadcast %cst_6 : f32 to vector<8x256xf32>
    %10 = arith.maximumf %8, %9 : vector<8x256xf32>
    %c0_7 = arith.constant 0 : index
    %c0_8 = arith.constant 0 : index
    %11 = vector.load %arg11[%c0_7, %c0_8] : memref<8x128xf32, #tpu.memory_space<vmem>>, vector<8x128xf32>
    %12 = arith.truncf %10 : vector<8x256xf32> to vector<8x256xbf16>
    %c0_9 = arith.constant 0 : index
    %c0_10 = arith.constant 0 : index
    %13 = vector.load %arg7[%c0_9, %c0_10] : memref<256x128xbf16, #tpu.memory_space<vmem>>, vector<256x128xbf16>
    %cst_11 = arith.constant dense<0.000000e+00> : vector<8x128xf32>
    %14 = tpu.matmul %12, %13, %cst_11 {dimension_numbers = #tpu.dot_dimension_numbers<[1], [0], [0], [1], [0, 0, 1, 1], [], []>} : vector<8x256xbf16>, vector<256x128xbf16>, vector<8x128xf32> -> vector<8x128xf32>
    %15 = arith.addf %11, %14 : vector<8x128xf32>
    %c0_12 = arith.constant 0 : index
    %c0_13 = arith.constant 0 : index
    %16 = vector.load %arg11[%c0_12, %c0_13] : memref<8x128xf32, #tpu.memory_space<vmem>>, vector<8x128xf32>
    tpu.vector_store %arg11[%c0_12, %c0_13], %15 {strides = array<i32>} : memref<8x128xf32, #tpu.memory_space<vmem>>, vector<8x128xf32>,
    %c0_i32_14 = arith.constant 0 : i32
    %17 = arith.cmpi eq, %arg1, %c0_i32_14 : i32
    %18 = arith.extui %17 : i1 to i32
    %c0_i32_15 = arith.constant 0 : i32
    %19 = arith.cmpi ne, %18, %c0_i32_15 : i32
    scf.if %19 {
      %c0_16 = arith.constant 0 : index
      %c0_17 = arith.constant 0 : index
      %20 = vector.load %arg11[%c0_16, %c0_17] : memref<8x128xf32, #tpu.memory_space<vmem>>, vector<8x128xf32>
      %c0_18 = arith.constant 0 : index
      %c0_19 = arith.constant 0 : index
      %21 = vector.load %arg8[%c0_18, %c0_19] : memref<1x128xf32, #tpu.memory_space<vmem>>, vector<1x128xf32>
      %22 = vector.broadcast %21 : vector<1x128xf32> to vector<8x128xf32>
      %23 = arith.addf %20, %22 : vector<8x128xf32>
      %c0_20 = arith.constant 0 : index
      %c0_21 = arith.constant 0 : index
      %24 = vector.load %arg9[%c0_20, %c0_21] : memref<8x128xf32, #tpu.memory_space<vmem>>, vector<8x128xf32>
      tpu.vector_store %arg9[%c0_20, %c0_21], %23 {strides = array<i32>} : memref<8x128xf32, #tpu.memory_space<vmem>>, vector<8x128xf32>,
    } else {
    }
    return
  }
  func.func @transform_0(%arg0: i32, %arg1: i32) -> (i32, i32) {
    %c0_i32 = arith.constant 0 : i32
    %c0_i32_0 = arith.constant 0 : i32
    return %arg0, %c0_i32 : i32, i32
  }
  func.func @transform_1(%arg0: i32, %arg1: i32) -> (i32, i32) {
    %c0_i32 = arith.constant 0 : i32
    %c0_i32_0 = arith.constant 0 : i32
    %c0_i32_1 = arith.constant 0 : i32
    return %c0_i32, %c0_i32_0 : i32, i32
  }
  func.func @transform_2(%arg0: i32, %arg1: i32) -> (i32, i32) {
    %c0_i32 = arith.constant 0 : i32
    %c0_i32_0 = arith.constant 0 : i32
    %c0_i32_1 = arith.constant 0 : i32
    return %c0_i32, %c0_i32_0 : i32, i32
  }
  func.func @transform_3(%arg0: i32, %arg1: i32) -> (i32, i32) {
    %c0_i32 = arith.constant 0 : i32
    %c0_i32_0 = arith.constant 0 : i32
    return %c0_i32, %arg1 : i32, i32
  }
  func.func @transform_4(%arg0: i32, %arg1: i32) -> (i32, i32) {
    %c0_i32 = arith.constant 0 : i32
    %c0_i32_0 = arith.constant 0 : i32
    return %c0_i32, %arg1 : i32, i32
  }
  func.func @transform_5(%arg0: i32, %arg1: i32) -> (i32, i32) {
    %c0_i32 = arith.constant 0 : i32
    %c0_i32_0 = arith.constant 0 : i32
    return %arg1, %c0_i32 : i32, i32
  }
  func.func @transform_6(%arg0: i32, %arg1: i32) -> (i32, i32) {
    %c0_i32 = arith.constant 0 : i32
    %c0_i32_0 = arith.constant 0 : i32
    %c0_i32_1 = arith.constant 0 : i32
    return %c0_i32, %c0_i32_0 : i32, i32
  }
  func.func @transform_7(%arg0: i32, %arg1: i32) -> (i32, i32) {
    %c0_i32 = arith.constant 0 : i32
    %c0_i32_0 = arith.constant 0 : i32
    return %arg0, %c0_i32 : i32, i32
  }
}

</mosaic_0001>

<bundles_post_ra>
// kernel: tpu_custom_call.1
= control target key start
LH: loop header
LB: loop body
LE: loop exit
PB: predicated region body
PF: predicated region fallthrough
CT: control target
= control target key end

     0   :  { %12 = vsyncpa [#allocation5], 0  ;;  %s1573_s0 = inlined_call_operand.hbm [shape: f32[16,128], index: 0, kind: input, shape index: {}]   ;;  %s1574_s1 = inlined_call_operand.vmem [shape: f32[1,128], index: 1, kind: input, shape index: {}]   ;;  %s1575_s2 = inlined_call_operand.vmem [shape: f32[1,128], index: 2, kind: input, shape index: {}]   ;;  %s1576_s3 = inlined_call_operand.hbm [shape: bf16[128,256], index: 3, kind: input, shape index: {}]   ;;  %s1577_s4 = inlined_call_operand.vmem [shape: f32[1,256], index: 4, kind: input, shape index: {}]   ;;  %s1578_s5 = inlined_call_operand.hbm [shape: bf16[256,128], index: 5, kind: input, shape index: {}]   ;;  %s1579_s6 = inlined_call_operand.vmem [shape: f32[1,128], index: 6, kind: input, shape index: {}]   ;;  %s1580_s7 = inlined_call_operand.hbm [shape: f32[16,128], index: 7, kind: output, shape index: {}]  }
   0x1   :  { %14 = vsyncpa [#allocation5 + $0x1], 0 }
   0x2   :  { %15 = vsyncpa [#allocation8], 0 }
   0x3   :  { %16 = vsyncpa [#allocation6], 0 }
   0x4   :  { %18 = vsyncpa [#allocation6 + $0x1], 0  ;;  %s1302_s24 = smov 0   ;;  %s1304_s25 = smov 0  }
   0x5   :  { %s1306_s26 = smov 0   ;;  %s1308_s27 = smov 0  }
   0x6   :  { %s1310_s28 = smov 0   ;;  %s1312_s29 = smov 0  }
   0x7 LB: > { %1587 = sst [smem:[#allocation14_spill]] %s1231_s24  ;;  %s874_s30 = sadd.s32 4294967295, %s1251_s29   ;;  %s1251_s29 = sphi %s1312_s29, %s24_s29   ;;  %s1247_s28 = sphi %s1310_s28, %s1608_s28   ;;  %s1243_s27 = sphi %s1308_s27, %s1607_s27   ;;  %s1239_s26 = sphi %s1306_s26, %s1606_s26   ;;  %s1235_s25 = sphi %s1304_s25, %s1605_s25   ;;  %s1231_s24 = sphi %s1302_s24, %s1604_s24  }
   0x8   : > { %s875_s8 = sadd.s32 4294967294, %s1251_s29   ;;  %p56_p0 = scmp.ne.s32.totalorder %s1235_s25, %s1231_s24 }
   0x9   : > { %p1336_p1 = scmp.eq.s32.totalorder %s874_s30, 0  ;;  %p1340_p2 = scmp.eq.s32.totalorder %s874_s30, 1 }
   0xa   : > { %p227_p3 = scmp.eq.s32.totalorder %s875_s8, 1  ;;  %p876_p5 = scmp.ge.s32.totalorder %s1251_s29, 1 }
   0xb   : > { %s1588_s9 = scalar_select %p1336_p1, 1, 0 }
   0xc   : > { %p1346_p4 = por %p1336_p1, %p56_p0  ;;  %p1351_p6 = por %p227_p3, %p56_p0 }
   0xd   : > { %p234_p7 = scmp.lt.s32.totalorder %s1251_s29, 3  ;;  %s1253_s14 = smov [#allocation7]  }
   0xe   : > { %s1590_s11 = scalar_select %p1346_p4, 1, 0 }
   0xf   : > { %s1591_s12 = scalar_select %p1351_p6, 1, 0 }
  0x10   : > { %p1356_p8 = pnand %p876_p5, %p234_p7  ;;  %s255_s15 = sshll.u32 %s1253_s14, 4  ;;  %s1360_s15 = int_to_ptr.vmem [resolvable:$true] %s255_s15 }
  0x11   : > { %1592 = sst [smem:[#allocation15_spill]] %s1591_s12  ;;  %s1254_s17 = smov [#allocation9]  }
  0x12   : > { %p961_p9 = pneg %p1356_p8  ;;  %s279_s18 = sshll.u32 %s1254_s17, 4  ;;  %s1371_s18 = int_to_ptr.vmem [resolvable:$true] %s279_s18 }
  0x13   : > { %s1079_s21 = scalar_lea.hbm %s1576_s3, 2048 }
  0x14   : > { %p1367_p11 = pnand %p961_p9, %p1336_p1  ;;  %p1080_p12 = scmp.ne.s32.totalorder %s1576_s3, %s1079_s21 }
  0x15   : > { %p1086_p5 = scmp.lt.u32.totalorder %s1079_s21, %s1576_s3 }
  0x16   : > { %p1081_p13 = pneg %p1367_p11 }
  0x18   : > { %p1082_p0 = pnand %p1081_p13, %p1080_p12 }
  0x1a   : > { %p1083_p3 = pneg %p1082_p0 }
  0x1c   : > { %p1088_p7 = pnand %p1086_p5, %p1083_p3 }
  0x1e   : > { %1091 = shalt.err (!%p1088_p7)
}
  0x1f   : > { %s1092_s14 = scalar_lea.vmem %s1360_s15, 2048  ;;  %p1100_p1 = scmp.lt.s32.totalorder %s1360_s15, %s1360_s15 }
  0x20   : > { %p1093_p9 = scmp.ne.s32.totalorder %s1360_s15, %s1092_s14  ;;  %p1101_p12 = scmp.lt.s32.totalorder %s1092_s14, %s1092_s14 }
  0x22   : > { %p1095_p10 = pnand %p1093_p9, %p1081_p13  ;;  %p1102_p0 = por %p1101_p12, %p1100_p1 }
  0x24   : > { %p1096_p6 = pneg %p1095_p10 }
  0x26   : > { %p1103_p4 = pnand %p1102_p0, %p1096_p6 }
  0x28   : > { %1106 = shalt.err (!%p1103_p4)
}
  0x29   : > { %s1255_s17 = smov 128   ;;  %s1256_s19 = smov 8  }
  0x2a   : > { %964 = dma.hbm_to_vmem [thread:$0]  (!%p1367_p11), %s1576_s3, 2048, %s1360_s15, [#allocation8], %s1255_s17, %s1255_s17, %s1256_s19  }
  0x2b   : > { %s1107_s30 = scalar_lea.hbm %s1578_s5, 2048 }
  0x2c   : > { %p1108_p1 = scmp.ne.s32.totalorder %s1578_s5, %s1107_s30  ;;  %p1114_p10 = scmp.lt.u32.totalorder %s1107_s30, %s1578_s5 }
  0x2e   : > { %p1110_p4 = pnand %p1108_p1, %p1081_p13 }
  0x30   : > { %p1111_p6 = pneg %p1110_p4 }
  0x32   : > { %p1116_p3 = pnand %p1114_p10, %p1111_p6 }
  0x34   : > { %1119 = shalt.err (!%p1116_p3)
}
  0x35   : > { %s1120_s15 = scalar_lea.vmem %s1371_s18, 2048  ;;  %p1128_p12 = scmp.lt.s32.totalorder %s1371_s18, %s1371_s18 }
  0x36   : > { %p1121_p5 = scmp.ne.s32.totalorder %s1371_s18, %s1120_s15  ;;  %p1129_p0 = scmp.lt.s32.totalorder %s1120_s15, %s1120_s15 }
  0x38   : > { %p1123_p7 = pnand %p1121_p5, %p1081_p13  ;;  %p1130_p1 = por %p1129_p0, %p1128_p12 }
  0x3a   : > { %p1124_p9 = pneg %p1123_p7 }
  0x3c   : > { %p1131_p4 = pnand %p1130_p1, %p1124_p9 }
  0x3e   : > { %1134 = shalt.err (!%p1131_p4)
}
  0x3f   : > { %s1257_s24 = smov 64   ;;  %s1258_s12 = smov 4  }
  0x40   : > { %967 = dma.hbm_to_vmem [thread:$0]  (!%p1367_p11), %s1578_s5, 2048, %s1371_s18, [#allocation8], %s1257_s24, %s1257_s24, %s1258_s12  }
  0x41   : > { %s36_s20 = sadd.s32 1, %s1247_s28  ;;  %s43_s21 = sadd.s32 1, %s1239_s26 }
  0x42   : > { %p38_p13 = scmp.ge.s32.totalorder %s36_s20, 2  ;;  %p50_p6 = scmp.ne.s32.totalorder %s1239_s26, %s1235_s25 }
  0x43   : > { %p51_p10 = scmp.eq.s32.totalorder %s1251_s29, 0  ;;  %p978_p3 = scmp.lt.s32.totalorder %s1251_s29, 2 }
  0x44   : > { %s1610_s20 = smov (%p38_p13, %s36_s20), 0  ;;  %p1435_p7 = por %p1340_p2, %p50_p6 }
  0x45   : > { %p52_p5 = por %p51_p10, %p50_p6  ;;  %s40_s16 = ssub.s32 %s1247_s28, %s1610_s20 }
  0x46   : > { %s1595_s22 = scalar_select %p1435_p7, 1, 0 }
  0x47   : > { %s296_s23 = sand.u32 1, %s1239_s26   ;;  %p41_p9 = scmp.eq.s32.totalorder %s40_s16, 0 }
  0x48   : > { %s881_s18 = sshll.u32 %s296_s23, 3  ;;  %s882_s30 = sshll.u32 %s1247_s28, 7 }
  0x49   : > { %s1444_s8 = scalar_select %p41_p9, %s1239_s26, %s43_s21  }
  0x4a   : > { %s1449_s24 = scalar_lea.hbm %s1573_s0, %s882_s30  ;;  %s300_s10 = scalar_lea.vmem [#allocation4], %s881_s18 }
  0x4b   : > { %s307_s12 = sshll.u32 %s300_s10, 4  ;;  %p1453_p2 = pnand %p978_p3, %p52_p5  ;;  %s1457_s12 = int_to_ptr.vmem [resolvable:$true] %s307_s12 }
  0x4c   : > { %s297_s19 = scalar_lea.sflag [#allocation5], %s296_s23  ;;  %s1135_s21 = scalar_lea.hbm %s1449_s24, 128 }
  0x4d   : > { %p1136_p11 = scmp.ne.s32.totalorder %s1449_s24, %s1135_s21  ;;  %p1137_p12 = pneg %p1453_p2 }
  0x4e   : > { %s1140_s30 = scalar_lea.hbm %s1573_s0, 256  ;;  %p1141_p4 = scmp.lt.u32.totalorder %s1449_s24, %s1573_s0 }
  0x4f   : > { %p1138_p0 = pnand %p1137_p12, %p1136_p11  ;;  %p1142_p13 = scmp.lt.u32.totalorder %s1140_s30, %s1135_s21 }
  0x50   : > { %p1144_p10 = scmp.lt.u32.totalorder %s1135_s21, %s1449_s24 }
  0x51   : > { %p1139_p1 = pneg %p1138_p0  ;;  %p1143_p6 = por %p1142_p13, %p1141_p4 }
  0x53   : > { %p1145_p3 = por %p1144_p10, %p1143_p6 }
  0x55   : > { %p1146_p5 = pnand %p1145_p3, %p1139_p1 }
  0x57   : > { %1149 = shalt.err (!%p1146_p5)
}
  0x58   : > { %s1150_s23 = scalar_lea.vmem %s1457_s12, 128  ;;  %s1259_s10 = smov [#allocation4]  }
  0x59   : > { %p1151_p9 = scmp.ne.s32.totalorder %s1457_s12, %s1150_s23  ;;  %s1155_s16 = sshll.u32 %s1259_s10, 4  ;;  %s1156_s16 = int_to_ptr.vmem [resolvable:$false] %s1155_s16 }
  0x5a   : > { %s1157_s18 = scalar_lea.vmem %s1156_s16, 256  ;;  %p1158_p7 = scmp.lt.s32.totalorder %s1457_s12, %s1156_s16 }
  0x5b   : > { %p1153_p11 = pnand %p1151_p9, %p1137_p12  ;;  %p1159_p4 = scmp.lt.s32.totalorder %s1157_s18, %s1150_s23 }
  0x5d   : > { %p1154_p0 = pneg %p1153_p11  ;;  %p1160_p13 = por %p1159_p4, %p1158_p7 }
  0x5f   : > { %p1161_p6 = pnand %p1160_p13, %p1154_p0 }
  0x61   : > { %1164 = shalt.err (!%p1161_p6)
}
  0x62   : > { %971 = dma.hbm_to_vmem [thread:$0]  (!%p1453_p2), %s1449_s24, 128, %s1457_s12, %s297_s19  }
  0x63   : > { %316 = sbr.rel (%p1356_p8) target bundleno = 883 (0x373), region = 48  ;;  %s1487_s21 = sand.u32 (!%p1356_p8), 1, %s1235_s25  }
  0x64   : > { %s884_s30 = sshll.u32 (!%p1356_p8), %s1487_s21, 3  ;;  %s319_s14 = scalar_lea.sflag (!%p1356_p8), [#allocation5], %s1487_s21 }
  0x65   : > { %s322_s15 = scalar_lea.vmem (!%p1356_p8), [#allocation4], %s884_s30  ;;  %p1597_p7 = scmp.ne.s32.totalorder (!%p1356_p8), %s1590_s11, 0 }
  0x6a   : > { %1218 = dma.done.wait (%p1597_p7), %s319_s14, 128  }
  0x6b   : > { %1220 = vsyncadd (%p1597_p7), %s319_s14, 4294967168  ;;  %p1598_p2 = scmp.ne.s32.totalorder %s1588_s9, 0 }
  0x6d   : > { %1222 = dma.done.wait (%p1598_p2), [#allocation8], 4096  }
  0x6e   : > { %1224 = vsyncadd (%p1598_p2), [#allocation8], 4294963200  ;;  %v377_v0 = vld [vmem:[%s322_s15] sm:$0xff]  ;;  %v1037_v1 = vld [vmem:[#allocation7 + $0x4] ss:$8 sps:$4 sm:$0xff]   ;;  %v1260_v21 = vmov 0   ;;  %v428_v49 = vlaneseq }
  0x6f   : > { %378 = vadd.xlane.f32.xlu0 %v377_v0  ;;  %518 = vmatprep.subr.bf16.mxu0 %v1037_v1  ;;  %v1039_v6 = vld [vmem:[#allocation7] ss:$8 sps:$4 sm:$0xff]   ;;  %v1040_v7 = vld [vmem:[#allocation7 + $0x14] ss:$8 sps:$4 sm:$0xff]   ;;  %v1042_v8 = vld [vmem:[#allocation7 + $0x10] ss:$8 sps:$4 sm:$0xff]  }
  0x70   : > { %519 = vmatpush1.bf16.msra.mxu0 %v1039_v6  ;;  %v1043_v9 = vld [vmem:[#allocation7 + $0x24] ss:$8 sps:$4 sm:$0xff]   ;;  %v1045_v10 = vld [vmem:[#allocation7 + $0x20] ss:$8 sps:$4 sm:$0xff]   ;;  %v1046_v11 = vld [vmem:[#allocation7 + $0x34] ss:$8 sps:$4 sm:$0xff]   ;;  %550 = vmatprep.mubr.bf16.mxu0 %v1260_v21 }
  0x71   : > { %520 = vmatprep.subr.bf16.mxu0 %v1040_v7  ;;  %v1048_v12 = vld [vmem:[#allocation7 + $0x30] ss:$8 sps:$4 sm:$0xff]   ;;  %v1049_v13 = vld [vmem:[#allocation7 + $0x44] ss:$8 sps:$4 sm:$0xff]   ;;  %v1051_v14 = vld [vmem:[#allocation7 + $0x40] ss:$8 sps:$4 sm:$0xff]  }
  0x72   : > { %v1052_v15 = vld [vmem:[#allocation7 + $0x54] ss:$8 sps:$4 sm:$0xff]   ;;  %v1054_v16 = vld [vmem:[#allocation7 + $0x50] ss:$8 sps:$4 sm:$0xff]   ;;  %v1055_v17 = vld [vmem:[#allocation7 + $0x64] ss:$8 sps:$4 sm:$0xff]  }
  0x73   : > { %v1057_v18 = vld [vmem:[#allocation7 + $0x60] ss:$8 sps:$4 sm:$0xff]   ;;  %v1058_v19 = vld [vmem:[#allocation7 + $0x74] ss:$8 sps:$4 sm:$0xff]   ;;  %v1060_v20 = vld [vmem:[#allocation7 + $0x70] ss:$8 sps:$4 sm:$0xff]  }
  0x74   : > { %521 = vmatpush1.bf16.msra.mxu0 %v1042_v8  ;;  %v1061_v22 = vld [vmem:[#allocation9 + $0x40] sm:$0xff]   ;;  %v1063_v24 = vld [vmem:[#allocation9 + $0x48] sm:$0xff]   ;;  %v1065_v26 = vld [vmem:[#allocation9 + $0x50] sm:$0xff]   ;;  %v429_v50 = vshrl.u32 %v428_v49, 7  ;;  %s924_s10 = sshll.u32 %s1243_s27, 7  ;;  %s364_s16 = scalar_lea.vmem [#allocation10], %s884_s30 }
  0x75   : > { %522 = vmatprep.subr.bf16.mxu0 %v1043_v9  ;;  %v1062_v23 = vld [vmem:[#allocation9] sm:$0xff]   ;;  %927 = vmatprep.subr.bf16.mxu1 %v1061_v22  ;;  %v1064_v25 = vld [vmem:[#allocation9 + $0x8] sm:$0xff]   ;;  %v1066_v27 = vld [vmem:[#allocation9 + $0x10] sm:$0xff]   ;;  %s761_s18 = sshll.u32 %s364_s16, 4  ;;  %s1524_s9 = scalar_lea.hbm %s1580_s7, %s924_s10  ;;  %s1526_s18 = int_to_ptr.vmem [resolvable:$true] %s761_s18 }
  0x76   : > { %928 = vmatpush3.bf16.msra.mxu1 %v1062_v23  ;;  %v1067_v28 = vld [vmem:[#allocation9 + $0x58] sm:$0xff]   ;;  %v1069_v30 = vld [vmem:[#allocation9 + $0x60] sm:$0xff]   ;;  %v1071_v32 = vld [vmem:[#allocation9 + $0x68] sm:$0xff]   ;;  %v430_v51 = vsub.s32 0, %v429_v50  ;;  %v434_v53 = vsub.s32 1, %v429_v50  ;;  %s748_s11 = scalar_lea.sflag [#allocation6], %s1487_s21 }
  0x77   : > { %929 = vmatprep.subr.bf16.mxu1 %v1063_v24  ;;  %v1068_v29 = vld [vmem:[#allocation9 + $0x18] sm:$0xff]   ;;  %v1070_v31 = vld [vmem:[#allocation9 + $0x20] sm:$0xff]   ;;  %v1072_v33 = vld [vmem:[#allocation9 + $0x28] sm:$0xff]   ;;  %s1165_s27 = scalar_lea.vmem %s1526_s18, 128  ;;  %p1599_p12 = scmp.ne.s32.totalorder %s1595_s22, 0 }
  0x78   : > { %523 = vmatpush1.bf16.msra.mxu0 %v1045_v10  ;;  %v888_v38 = vld [vmem:[%s1574_s1] ss:$0 sm:$0xff]  ;;  %v1073_v45 = vld [vmem:[#allocation9 + $0x70] sm:$0xff]   ;;  %v1075_v47 = vld [vmem:[#allocation9 + $0x78] sm:$0xff]   ;;  %p1166_p8 = scmp.ne.s32.totalorder %s1526_s18, %s1165_s27  ;;  %s1261_s30 = smov [#allocation10]  }
  0x79   : > { %524 = vmatprep.subr.bf16.mxu0 %v1046_v11  ;;  %v889_v40 = vld [vmem:[%s1575_s2] ss:$0 sm:$0xff]  ;;  %v1074_v46 = vld [vmem:[#allocation9 + $0x30] sm:$0xff]   ;;  %v1076_v48 = vld [vmem:[#allocation9 + $0x38] sm:$0xff]   ;;  %s1169_s13 = sshll.u32 %s1261_s30, 4  ;;  %s1170_s13 = int_to_ptr.vmem [resolvable:$false] %s1169_s13 }
  0x7a   : > { %930 = vmatpush3.bf16.msra.mxu1 %v1064_v25  ;;  %v426_v52 = vld [vmem:[%s1577_s4] sm:$0x3]  ;;  %p1167_p1 = pnand %p1166_p8, %p1599_p12  ;;  %s1171_s24 = scalar_lea.vmem %s1170_s13, 256 }
  0x7b   : > { %931 = vmatprep.subr.bf16.mxu1 %v1065_v26  ;;  %v431_v54 = vrot.slane %v426_v52, %v430_v51  ;;  %v435_v55 = vrot.slane %v426_v52, %v434_v53  ;;  %p1172_p3 = scmp.lt.s32.totalorder %s1526_s18, %s1170_s13  ;;  %p1173_p5 = scmp.lt.s32.totalorder %s1171_s24, %s1165_s27 }
  0x7c   : > { %525 = vmatpush1.bf16.msra.mxu0 %v1048_v12  ;;  %p1168_p10 = pneg %p1167_p1 }
  0x7d   : > { %526 = vmatprep.subr.bf16.mxu0 %v1049_v13  ;;  %p1174_p9 = por %p1173_p5, %p1172_p3 }
  0x7e   : > { %932 = vmatpush3.bf16.msra.mxu1 %v1066_v27 }
  0x7f   : > { %933 = vmatprep.subr.bf16.mxu1 %v1067_v28  ;;  %p1175_p11 = pnand %p1174_p9, %p1168_p10 }
  0x80   : > { %527 = vmatpush1.bf16.msra.mxu0 %v1051_v14 }
  0x81   : > { %528 = vmatprep.subr.bf16.mxu0 %v1052_v15 }
  0x82   : > { %934 = vmatpush3.bf16.msra.mxu1 %v1068_v29 }
  0x83   : > { %935 = vmatprep.subr.bf16.mxu1 %v1069_v30 }
  0x84   : > { %529 = vmatpush1.bf16.msra.mxu0 %v1054_v16 }
  0x85   : > { %530 = vmatprep.subr.bf16.mxu0 %v1055_v17 }
  0x86   : > { %936 = vmatpush3.bf16.msra.mxu1 %v1070_v31 }
  0x87   : > { %937 = vmatprep.subr.bf16.mxu1 %v1071_v32 }
  0x88   : > { %531 = vmatpush1.bf16.msra.mxu0 %v1057_v18 }
  0x89   : > { %532 = vmatprep.subr.bf16.mxu0 %v1058_v19 }
  0x8a   : > { %938 = vmatpush3.bf16.msra.mxu1 %v1072_v33 }
  0x8b   : > { %939 = vmatprep.subr.bf16.mxu1 %v1073_v45 }
  0x8c   : > { %533 = vmatpush1.bf16.msra.mxu0 %v1060_v20 }
  0x8e   : > { %940 = vmatpush3.bf16.msra.mxu1 %v1074_v46 }
  0x8f   : > { %941 = vmatprep.subr.bf16.mxu1 %v1075_v47 }
  0x92   : > { %942 = vmatpush3.bf16.msra.mxu1 %v1076_v48 }
  0xfc   : > { %v379_v2 = vpop.xlane.xlu0 %378 }
  0xfd   : > { %v381_v3 = vmul.f32 0.0078125, %v379_v2 }
  0xff   : > { %v1501_v4 = vsub.f32 %v377_v0, %v381_v3 }
 0x101   : > { %v383_v5 = vmul.f32 %v1501_v4, %v1501_v4 }
 0x103   : > { %384 = vadd.xlane.f32.xlu0 %v383_v5 }
 0x190   : > { %v385_v34 = vpop.xlane.xlu0 %384 }
 0x191   : > { %v386_v35 = vmul.f32 0.0078125, %v385_v34 }
 0x193   : > { %v387_v36 = vadd.f32 1e-06, %v386_v35 }
 0x195   : > { %1077 = vrsqrt.f32 %v387_v36 }
 0x19f   : > { %v1078_v37 = vpop.eup %1077 }
 0x1a0   : > { %v389_v39 = vmul.f32 %v1078_v37, %v1501_v4  ;;  %v922_v4 = vld [vmem:[%s1579_s6] ss:$0 sm:$0xff] }
 0x1a2   : > { %v397_v41 = vmul.f32 %v888_v38, %v389_v39 }
 0x1a4   : > { %v405_v42 = vadd.f32 %v889_v40, %v397_v41 }
 0x1a6   : > { %v406_v43 = vpack.c.bf16 %v405_v42, %v405_v42 }
 0x1a8   : > { %407 = vst [vmem:[#allocation2] sm:$0xf] %v406_v43 }
 0x1af   : > { %v409_v44 = vld [vmem:[#allocation2] sm:$0xf] }
 0x1b0   : > { %551 = vmatmul.mubr.bf16.vlgmr.msra.gmra.mrb[0].mxu0 %v409_v44 }
 0x283   : > { %v552_v56 = vpop.f32.mrb[0].mxu0 }
 0x284   : > { %v553_v57 = vadd.f32 %v552_v56, %v431_v54  ;;  %v554_v58 = vpop.f32.mrb[1].mxu0 }
 0x285   : > { %v555_v59 = vadd.f32 %v554_v58, %v435_v55  ;;  %v556_v60 = vpop.f32.mrb[2].mxu0 }
 0x286   : > { %v559_v61 = vmax.f32 %v553_v57, 0.0  ;;  %v557_v62 = vpop.f32.mrb[3].mxu0 }
 0x287   : > { %v560_v63 = vmax.f32 %v555_v59, 0.0 }
 0x288   : > { %v562_v1 = vpack.c.bf16 %v559_v61, %v559_v61 }
 0x289   : > { %v563_v0 = vpack.c.bf16 %v560_v63, %v560_v63 }
 0x28b   : > { %724 = vmatprep.mubr.bf16.mxu1 %v563_v0 }
 0x28c   : > { %725 = vmatmul.mubr.bf16.vlgmr.msra.gmra.mrb[0].mxu1 %v562_v1 }
 0x35f   : > { %v943_v2 = vpop.f32.mrb[0].mxu1 }
 0x360   : > { %v944_v3 = vpop.f32.mrb[1].mxu1 }
 0x361   : > { %v945_v5 = vadd.f32 %v944_v3, %v943_v2  ;;  %v946_v6 = vpop.f32.mrb[2].mxu1 }
 0x362   : > { %v947_v7 = vpop.f32.mrb[3].mxu1 }
 0x363   : > { %v745_v8 = vadd.f32 %v945_v5, %v922_v4 }
 0x365   : > { %746 = vst [vmem:[%s364_s16] sm:$0xff] %v745_v8 }
 0x366   : > { %1178 = shalt.err (!%p1175_p11)
}
 0x367   : > { %s1179_s21 = scalar_lea.hbm %s1524_s9, 128  ;;  %s1183_s19 = scalar_lea.hbm %s1580_s7, 256 }
 0x368   : > { %p1180_p0 = scmp.ne.s32.totalorder %s1524_s9, %s1179_s21  ;;  %p1184_p6 = scmp.lt.u32.totalorder %s1524_s9, %s1580_s7 }
 0x369   : > { %p1185_p7 = scmp.lt.u32.totalorder %s1183_s19, %s1179_s21  ;;  %p1187_p8 = scmp.lt.u32.totalorder %s1179_s21, %s1524_s9 }
 0x36a   : > { %p1181_p4 = pnand %p1180_p0, %p1599_p12 }
 0x36b   : > { %p1186_p2 = por %p1185_p7, %p1184_p6 }
 0x36c   : > { %p1182_p13 = pneg %p1181_p4 }
 0x36d   : > { %p1188_p1 = por %p1187_p8, %p1186_p2 }
 0x36f   : > { %p1189_p10 = pnand %p1188_p1, %p1182_p13 }
 0x371   : > { %1192 = shalt.err (!%p1189_p10)
}
 0x372   : > { %959 = dma.vmem_to_hbm [thread:$0]  (%p1599_p12), %s1526_s18, 128, %s1524_s9, %s748_s11  }
 0x373 PF: > { %s1600_s16 = sld [smem:[#allocation14_spill]]  ;;  %s1601_s14 = sld [smem:[#allocation15_spill]] }
 0x374   : > { %p1603_p5 = scmp.ge.s32.totalorder %s1251_s29, 2 }
 0x379   : > { %s773_s15 = sand.u32 1, %s1600_s16   ;;  %p1602_p3 = scmp.ne.s32.totalorder %s1601_s14, 0 }
 0x37a   : > { %s774_s27 = scalar_lea.sflag [#allocation6], %s773_s15 }
 0x37b   : > { %p973_p9 = pnand %p1603_p5, %p1602_p3 }
 0x37d   : > { %1226 = dma.done.wait (!%p973_p9), %s774_s27, 128  }
 0x37e   : > { %1228 = vsyncadd (!%p973_p9), %s774_s27, 4294967168  ;;  %s24_s29 = sadd.s32 1, %s1251_s29   ;;  %s1604_s24 = smov %s1235_s25 }
 0x37f   : > { %p21_p11 = scmp.ge.s32.totalorder %s24_s29, 4   ;;  %s1605_s25 = smov %s1239_s26 }
 0x380   : > { %s1606_s26 = smov %s1444_s8  ;;  %s1607_s27 = smov %s1247_s28 }
 0x381   : > { %s1608_s28 = smov %s1610_s20  ;;  %23 = sbr.rel (!%p21_p11) target bundleno = 7 (0x7), region = 114 }
 0x388   :  { %779 = vsyncpa [#allocation5], 1 }
 0x389   :  { %781 = vsyncpa [#allocation5 + $0x1], 1 }
 0x38a   :  { %782 = vsyncpa [#allocation8], 1 }
 0x38b   :  { %783 = vsyncpa [#allocation6], 1 }
 0x38c   :  { %785 = vsyncpa [#allocation6 + $0x1], 1 }

// kernel: tpu_custom_call.1
= control target key start
LH: loop header
LB: loop body
LE: loop exit
PB: predicated region body
PF: predicated region fallthrough
CT: control target
= control target key end

     0   :  { %12 = vsyncpa [#allocation5], 0  ;;  %s1573_s0 = inlined_call_operand.hbm [shape: f32[16,128], index: 0, kind: input, shape index: {}]   ;;  %s1574_s1 = inlined_call_operand.vmem [shape: f32[1,128], index: 1, kind: input, shape index: {}]   ;;  %s1575_s2 = inlined_call_operand.vmem [shape: f32[1,128], index: 2, kind: input, shape index: {}]   ;;  %s1576_s3 = inlined_call_operand.hbm [shape: bf16[128,256], index: 3, kind: input, shape index: {}]   ;;  %s1577_s4 = inlined_call_operand.vmem [shape: f32[1,256], index: 4, kind: input, shape index: {}]   ;;  %s1578_s5 = inlined_call_operand.hbm [shape: bf16[256,128], index: 5, kind: input, shape index: {}]   ;;  %s1579_s6 = inlined_call_operand.vmem [shape: f32[1,128], index: 6, kind: input, shape index: {}]   ;;  %s1580_s7 = inlined_call_operand.hbm [shape: f32[16,128], index: 7, kind: output, shape index: {}]  }
   0x1   :  { %14 = vsyncpa [#allocation5 + $0x1], 0 }
   0x2   :  { %15 = vsyncpa [#allocation8], 0 }
   0x3   :  { %16 = vsyncpa [#allocation6], 0 }
   0x4   :  { %18 = vsyncpa [#allocation6 + $0x1], 0  ;;  %s1302_s24 = smov 0   ;;  %s1304_s25 = smov 0  }
   0x5   :  { %s1306_s26 = smov 0   ;;  %s1308_s27 = smov 0  }
   0x6   :  { %s1310_s28 = smov 0   ;;  %s1312_s29 = smov 0  }
   0x7 LB: > { %1587 = sst [smem:[#allocation14_spill]] %s1231_s24  ;;  %s874_s30 = sadd.s32 4294967295, %s1251_s29   ;;  %s1251_s29 = sphi %s1312_s29, %s24_s29   ;;  %s1247_s28 = sphi %s1310_s28, %s1608_s28   ;;  %s1243_s27 = sphi %s1308_s27, %s1607_s27   ;;  %s1239_s26 = sphi %s1306_s26, %s1606_s26   ;;  %s1235_s25 = sphi %s1304_s25, %s1605_s25   ;;  %s1231_s24 = sphi %s1302_s24, %s1604_s24  }
   0x8   : > { %s875_s8 = sadd.s32 4294967294, %s1251_s29   ;;  %p56_p0 = scmp.ne.s32.totalorder %s1235_s25, %s1231_s24 }
   0x9   : > { %p1336_p1 = scmp.eq.s32.totalorder %s874_s30, 0  ;;  %p1340_p2 = scmp.eq.s32.totalorder %s874_s30, 1 }
   0xa   : > { %p227_p3 = scmp.eq.s32.totalorder %s875_s8, 1  ;;  %p876_p5 = scmp.ge.s32.totalorder %s1251_s29, 1 }
   0xb   : > { %s1588_s9 = scalar_select %p1336_p1, 1, 0 }
   0xc   : > { %p1346_p4 = por %p1336_p1, %p56_p0  ;;  %p1351_p6 = por %p227_p3, %p56_p0 }
   0xd   : > { %p234_p7 = scmp.lt.s32.totalorder %s1251_s29, 3  ;;  %s1253_s14 = smov [#allocation7]  }
   0xe   : > { %s1590_s11 = scalar_select %p1346_p4, 1, 0 }
   0xf   : > { %s1591_s12 = scalar_select %p1351_p6, 1, 0 }
  0x10   : > { %p1356_p8 = pnand %p876_p5, %p234_p7  ;;  %s255_s15 = sshll.u32 %s1253_s14, 4  ;;  %s1360_s15 = int_to_ptr.vmem [resolvable:$true] %s255_s15 }
  0x11   : > { %1592 = sst [smem:[#allocation15_spill]] %s1591_s12  ;;  %s1254_s17 = smov [#allocation9]  }
  0x12   : > { %p961_p9 = pneg %p1356_p8  ;;  %s279_s18 = sshll.u32 %s1254_s17, 4  ;;  %s1371_s18 = int_to_ptr.vmem [resolvable:$true] %s279_s18 }
  0x13   : > { %s1079_s21 = scalar_lea.hbm %s1576_s3, 2048 }
  0x14   : > { %p1367_p11 = pnand %p961_p9, %p1336_p1  ;;  %p1080_p12 = scmp.ne.s32.totalorder %s1576_s3, %s1079_s21 }
  0x15   : > { %p1086_p5 = scmp.lt.u32.totalorder %s1079_s21, %s1576_s3 }
  0x16   : > { %p1081_p13 = pneg %p1367_p11 }
  0x18   : > { %p1082_p0 = pnand %p1081_p13, %p1080_p12 }
  0x1a   : > { %p1083_p3 = pneg %p1082_p0 }
  0x1c   : > { %p1088_p7 = pnand %p1086_p5, %p1083_p3 }
  0x1e   : > { %1091 = shalt.err (!%p1088_p7)
}
  0x1f   : > { %s1092_s14 = scalar_lea.vmem %s1360_s15, 2048  ;;  %p1100_p1 = scmp.lt.s32.totalorder %s1360_s15, %s1360_s15 }
  0x20   : > { %p1093_p9 = scmp.ne.s32.totalorder %s1360_s15, %s1092_s14  ;;  %p1101_p12 = scmp.lt.s32.totalorder %s1092_s14, %s1092_s14 }
  0x22   : > { %p1095_p10 = pnand %p1093_p9, %p1081_p13  ;;  %p1102_p0 = por %p1101_p12, %p1100_p1 }
  0x24   : > { %p1096_p6 = pneg %p1095_p10 }
  0x26   : > { %p1103_p4 = pnand %p1102_p0, %p1096_p6 }
  0x28   : > { %1106 = shalt.err (!%p1103_p4)
}
  0x29   : > { %s1255_s17 = smov 128   ;;  %s1256_s19 = smov 8  }
  0x2a   : > { %964 = dma.hbm_to_vmem [thread:$0]  (!%p1367_p11), %s1576_s3, 2048, %s1360_s15, [#allocation8], %s1255_s17, %s1255_s17, %s1256_s19  }
  0x2b   : > { %s1107_s30 = scalar_lea.hbm %s1578_s5, 2048 }
  0x2c   : > { %p1108_p1 = scmp.ne.s32.totalorder %s1578_s5, %s1107_s30  ;;  %p1114_p10 = scmp.lt.u32.totalorder %s1107_s30, %s1578_s5 }
  0x2e   : > { %p1110_p4 = pnand %p1108_p1, %p1081_p13 }
  0x30   : > { %p1111_p6 = pneg %p1110_p4 }
  0x32   : > { %p1116_p3 = pnand %p1114_p10, %p1111_p6 }
  0x34   : > { %1119 = shalt.err (!%p1116_p3)
}
  0x35   : > { %s1120_s15 = scalar_lea.vmem %s1371_s18, 2048  ;;  %p1128_p12 = scmp.lt.s32.totalorder %s1371_s18, %s1371_s18 }
  0x36   : > { %p1121_p5 = scmp.ne.s32.totalorder %s1371_s18, %s1120_s15  ;;  %p1129_p0 = scmp.lt.s32.totalorder %s1120_s15, %s1120_s15 }
  0x38   : > { %p1123_p7 = pnand %p1121_p5, %p1081_p13  ;;  %p1130_p1 = por %p1129_p0, %p1128_p12 }
  0x3a   : > { %p1124_p9 = pneg %p1123_p7 }
  0x3c   : > { %p1131_p4 = pnand %p1130_p1, %p1124_p9 }
  0x3e   : > { %1134 = shalt.err (!%p1131_p4)
}
  0x3f   : > { %s1257_s24 = smov 64   ;;  %s1258_s12 = smov 4  }
  0x40   : > { %967 = dma.hbm_to_vmem [thread:$0]  (!%p1367_p11), %s1578_s5, 2048, %s1371_s18, [#allocation8], %s1257_s24, %s1257_s24, %s1258_s12  }
  0x41   : > { %s36_s20 = sadd.s32 1, %s1247_s28  ;;  %s43_s21 = sadd.s32 1, %s1239_s26 }
  0x42   : > { %p38_p13 = scmp.ge.s32.totalorder %s36_s20, 2  ;;  %p50_p6 = scmp.ne.s32.totalorder %s1239_s26, %s1235_s25 }
  0x43   : > { %p51_p10 = scmp.eq.s32.totalorder %s1251_s29, 0  ;;  %p978_p3 = scmp.lt.s32.totalorder %s1251_s29, 2 }
  0x44   : > { %s1610_s20 = smov (%p38_p13, %s36_s20), 0  ;;  %p1435_p7 = por %p1340_p2, %p50_p6 }
  0x45   : > { %p52_p5 = por %p51_p10, %p50_p6  ;;  %s40_s16 = ssub.s32 %s1247_s28, %s1610_s20 }
  0x46   : > { %s1595_s22 = scalar_select %p1435_p7, 1, 0 }
  0x47   : > { %s296_s23 = sand.u32 1, %s1239_s26   ;;  %p41_p9 = scmp.eq.s32.totalorder %s40_s16, 0 }
  0x48   : > { %s881_s18 = sshll.u32 %s296_s23, 3  ;;  %s882_s30 = sshll.u32 %s1247_s28, 7 }
  0x49   : > { %s1444_s8 = scalar_select %p41_p9, %s1239_s26, %s43_s21  }
  0x4a   : > { %s1449_s24 = scalar_lea.hbm %s1573_s0, %s882_s30  ;;  %s300_s10 = scalar_lea.vmem [#allocation4], %s881_s18 }
  0x4b   : > { %s307_s12 = sshll.u32 %s300_s10, 4  ;;  %p1453_p2 = pnand %p978_p3, %p52_p5  ;;  %s1457_s12 = int_to_ptr.vmem [resolvable:$true] %s307_s12 }
  0x4c   : > { %s297_s19 = scalar_lea.sflag [#allocation5], %s296_s23  ;;  %s1135_s21 = scalar_lea.hbm %s1449_s24, 128 }
  0x4d   : > { %p1136_p11 = scmp.ne.s32.totalorder %s1449_s24, %s1135_s21  ;;  %p1137_p12 = pneg %p1453_p2 }
  0x4e   : > { %s1140_s30 = scalar_lea.hbm %s1573_s0, 256  ;;  %p1141_p4 = scmp.lt.u32.totalorder %s1449_s24, %s1573_s0 }
  0x4f   : > { %p1138_p0 = pnand %p1137_p12, %p1136_p11  ;;  %p1142_p13 = scmp.lt.u32.totalorder %s1140_s30, %s1135_s21 }
  0x50   : > { %p1144_p10 = scmp.lt.u32.totalorder %s1135_s21, %s1449_s24 }
  0x51   : > { %p1139_p1 = pneg %p1138_p0  ;;  %p1143_p6 = por %p1142_p13, %p1141_p4 }
  0x53   : > { %p1145_p3 = por %p1144_p10, %p1143_p6 }
  0x55   : > { %p1146_p5 = pnand %p1145_p3, %p1139_p1 }
  0x57   : > { %1149 = shalt.err (!%p1146_p5)
}
  0x58   : > { %s1150_s23 = scalar_lea.vmem %s1457_s12, 128  ;;  %s1259_s10 = smov [#allocation4]  }
  0x59   : > { %p1151_p9 = scmp.ne.s32.totalorder %s1457_s12, %s1150_s23  ;;  %s1155_s16 = sshll.u32 %s1259_s10, 4  ;;  %s1156_s16 = int_to_ptr.vmem [resolvable:$false] %s1155_s16 }
  0x5a   : > { %s1157_s18 = scalar_lea.vmem %s1156_s16, 256  ;;  %p1158_p7 = scmp.lt.s32.totalorder %s1457_s12, %s1156_s16 }
  0x5b   : > { %p1153_p11 = pnand %p1151_p9, %p1137_p12  ;;  %p1159_p4 = scmp.lt.s32.totalorder %s1157_s18, %s1150_s23 }
  0x5d   : > { %p1154_p0 = pneg %p1153_p11  ;;  %p1160_p13 = por %p1159_p4, %p1158_p7 }
  0x5f   : > { %p1161_p6 = pnand %p1160_p13, %p1154_p0 }
  0x61   : > { %1164 = shalt.err (!%p1161_p6)
}
  0x62   : > { %971 = dma.hbm_to_vmem [thread:$0]  (!%p1453_p2), %s1449_s24, 128, %s1457_s12, %s297_s19  }
  0x63   : > { %316 = sbr.rel (%p1356_p8) target bundleno = 883 (0x373), region = 48  ;;  %s1487_s21 = sand.u32 (!%p1356_p8), 1, %s1235_s25  }
  0x64   : > { %s884_s30 = sshll.u32 (!%p1356_p8), %s1487_s21, 3  ;;  %s319_s14 = scalar_lea.sflag (!%p1356_p8), [#allocation5], %s1487_s21 }
  0x65   : > { %s322_s15 = scalar_lea.vmem (!%p1356_p8), [#allocation4], %s884_s30  ;;  %p1597_p7 = scmp.ne.s32.totalorder (!%p1356_p8), %s1590_s11, 0 }
  0x6a   : > { %1218 = dma.done.wait (%p1597_p7), %s319_s14, 128  }
  0x6b   : > { %1220 = vsyncadd (%p1597_p7), %s319_s14, 4294967168  ;;  %p1598_p2 = scmp.ne.s32.totalorder %s1588_s9, 0 }
  0x6d   : > { %1222 = dma.done.wait (%p1598_p2), [#allocation8], 4096  }
  0x6e   : > { %1224 = vsyncadd (%p1598_p2), [#allocation8], 4294963200  ;;  %v377_v0 = vld [vmem:[%s322_s15] sm:$0xff]  ;;  %v1037_v1 = vld [vmem:[#allocation7 + $0x4] ss:$8 sps:$4 sm:$0xff]   ;;  %v1260_v21 = vmov 0   ;;  %v428_v49 = vlaneseq }
  0x6f   : > { %378 = vadd.xlane.f32.xlu0 %v377_v0  ;;  %518 = vmatprep.subr.bf16.mxu0 %v1037_v1  ;;  %v1039_v6 = vld [vmem:[#allocation7] ss:$8 sps:$4 sm:$0xff]   ;;  %v1040_v7 = vld [vmem:[#allocation7 + $0x14] ss:$8 sps:$4 sm:$0xff]   ;;  %v1042_v8 = vld [vmem:[#allocation7 + $0x10] ss:$8 sps:$4 sm:$0xff]  }
  0x70   : > { %519 = vmatpush1.bf16.msra.mxu0 %v1039_v6  ;;  %v1043_v9 = vld [vmem:[#allocation7 + $0x24] ss:$8 sps:$4 sm:$0xff]   ;;  %v1045_v10 = vld [vmem:[#allocation7 + $0x20] ss:$8 sps:$4 sm:$0xff]   ;;  %v1046_v11 = vld [vmem:[#allocation7 + $0x34] ss:$8 sps:$4 sm:$0xff]   ;;  %550 = vmatprep.mubr.bf16.mxu0 %v1260_v21 }
  0x71   : > { %520 = vmatprep.subr.bf16.mxu0 %v1040_v7  ;;  %v1048_v12 = vld [vmem:[#allocation7 + $0x30] ss:$8 sps:$4 sm:$0xff]   ;;  %v1049_v13 = vld [vmem:[#allocation7 + $0x44] ss:$8 sps:$4 sm:$0xff]   ;;  %v1051_v14 = vld [vmem:[#allocation7 + $0x40] ss:$8 sps:$4 sm:$0xff]  }
  0x72   : > { %v1052_v15 = vld [vmem:[#allocation7 + $0x54] ss:$8 sps:$4 sm:$0xff]   ;;  %v1054_v16 = vld [vmem:[#allocation7 + $0x50] ss:$8 sps:$4 sm:$0xff]   ;;  %v1055_v17 = vld [vmem:[#allocation7 + $0x64] ss:$8 sps:$4 sm:$0xff]  }
  0x73   : > { %v1057_v18 = vld [vmem:[#allocation7 + $0x60] ss:$8 sps:$4 sm:$0xff]   ;;  %v1058_v19 = vld [vmem:[#allocation7 + $0x74] ss:$8 sps:$4 sm:$0xff]   ;;  %v1060_v20 = vld [vmem:[#allocation7 + $0x70] ss:$8 sps:$4 sm:$0xff]  }
  0x74   : > { %521 = vmatpush1.bf16.msra.mxu0 %v1042_v8  ;;  %v1061_v22 = vld [vmem:[#allocation9 + $0x40] sm:$0xff]   ;;  %v1063_v24 = vld [vmem:[#allocation9 + $0x48] sm:$0xff]   ;;  %v1065_v26 = vld [vmem:[#allocation9 + $0x50] sm:$0xff]   ;;  %v429_v50 = vshrl.u32 %v428_v49, 7  ;;  %s924_s10 = sshll.u32 %s1243_s27, 7  ;;  %s364_s16 = scalar_lea.vmem [#allocation10], %s884_s30 }
  0x75   : > { %522 = vmatprep.subr.bf16.mxu0 %v1043_v9  ;;  %v1062_v23 = vld [vmem:[#allocation9] sm:$0xff]   ;;  %927 = vmatprep.subr.bf16.mxu1 %v1061_v22  ;;  %v1064_v25 = vld [vmem:[#allocation9 + $0x8] sm:$0xff]   ;;  %v1066_v27 = vld [vmem:[#allocation9 + $0x10] sm:$0xff]   ;;  %s761_s18 = sshll.u32 %s364_s16, 4  ;;  %s1524_s9 = scalar_lea.hbm %s1580_s7, %s924_s10  ;;  %s1526_s18 = int_to_ptr.vmem [resolvable:$true] %s761_s18 }
  0x76   : > { %928 = vmatpush3.bf16.msra.mxu1 %v1062_v23  ;;  %v1067_v28 = vld [vmem:[#allocation9 + $0x58] sm:$0xff]   ;;  %v1069_v30 = vld [vmem:[#allocation9 + $0x60] sm:$0xff]   ;;  %v1071_v32 = vld [vmem:[#allocation9 + $0x68] sm:$0xff]   ;;  %v430_v51 = vsub.s32 0, %v429_v50  ;;  %v434_v53 = vsub.s32 1, %v429_v50  ;;  %s748_s11 = scalar_lea.sflag [#allocation6], %s1487_s21 }
  0x77   : > { %929 = vmatprep.subr.bf16.mxu1 %v1063_v24  ;;  %v1068_v29 = vld [vmem:[#allocation9 + $0x18] sm:$0xff]   ;;  %v1070_v31 = vld [vmem:[#allocation9 + $0x20] sm:$0xff]   ;;  %v1072_v33 = vld [vmem:[#allocation9 + $0x28] sm:$0xff]   ;;  %s1165_s27 = scalar_lea.vmem %s1526_s18, 128  ;;  %p1599_p12 = scmp.ne.s32.totalorder %s1595_s22, 0 }
  0x78   : > { %523 = vmatpush1.bf16.msra.mxu0 %v1045_v10  ;;  %v888_v38 = vld [vmem:[%s1574_s1] ss:$0 sm:$0xff]  ;;  %v1073_v45 = vld [vmem:[#allocation9 + $0x70] sm:$0xff]   ;;  %v1075_v47 = vld [vmem:[#allocation9 + $0x78] sm:$0xff]   ;;  %p1166_p8 = scmp.ne.s32.totalorder %s1526_s18, %s1165_s27  ;;  %s1261_s30 = smov [#allocation10]  }
  0x79   : > { %524 = vmatprep.subr.bf16.mxu0 %v1046_v11  ;;  %v889_v40 = vld [vmem:[%s1575_s2] ss:$0 sm:$0xff]  ;;  %v1074_v46 = vld [vmem:[#allocation9 + $0x30] sm:$0xff]   ;;  %v1076_v48 = vld [vmem:[#allocation9 + $0x38] sm:$0xff]   ;;  %s1169_s13 = sshll.u32 %s1261_s30, 4  ;;  %s1170_s13 = int_to_ptr.vmem [resolvable:$false] %s1169_s13 }
  0x7a   : > { %930 = vmatpush3.bf16.msra.mxu1 %v1064_v25  ;;  %v426_v52 = vld [vmem:[%s1577_s4] sm:$0x3]  ;;  %p1167_p1 = pnand %p1166_p8, %p1599_p12  ;;  %s1171_s24 = scalar_lea.vmem %s1170_s13, 256 }
  0x7b   : > { %931 = vmatprep.subr.bf16.mxu1 %v1065_v26  ;;  %v431_v54 = vrot.slane %v426_v52, %v430_v51  ;;  %v435_v55 = vrot.slane %v426_v52, %v434_v53  ;;  %p1172_p3 = scmp.lt.s32.totalorder %s1526_s18, %s1170_s13  ;;  %p1173_p5 = scmp.lt.s32.totalorder %s1171_s24, %s1165_s27 }
  0x7c   : > { %525 = vmatpush1.bf16.msra.mxu0 %v1048_v12  ;;  %p1168_p10 = pneg %p1167_p1 }
  0x7d   : > { %526 = vmatprep.subr.bf16.mxu0 %v1049_v13  ;;  %p1174_p9 = por %p1173_p5, %p1172_p3 }
  0x7e   : > { %932 = vmatpush3.bf16.msra.mxu1 %v1066_v27 }
  0x7f   : > { %933 = vmatprep.subr.bf16.mxu1 %v1067_v28  ;;  %p1175_p11 = pnand %p1174_p9, %p1168_p10 }
  0x80   : > { %527 = vmatpush1.bf16.msra.mxu0 %v1051_v14 }
  0x81   : > { %528 = vmatprep.subr.bf16.mxu0 %v1052_v15 }
  0x82   : > { %934 = vmatpush3.bf16.msra.mxu1 %v1068_v29 }
  0x83   : > { %935 = vmatprep.subr.bf16.mxu1 %v1069_v30 }
  0x84   : > { %529 = vmatpush1.bf16.msra.mxu0 %v1054_v16 }
  0x85   : > { %530 = vmatprep.subr.bf16.mxu0 %v1055_v17 }
  0x86   : > { %936 = vmatpush3.bf16.msra.mxu1 %v1070_v31 }
  0x87   : > { %937 = vmatprep.subr.bf16.mxu1 %v1071_v32 }
  0x88   : > { %531 = vmatpush1.bf16.msra.mxu0 %v1057_v18 }
  0x89   : > { %532 = vmatprep.subr.bf16.mxu0 %v1058_v19 }
  0x8a   : > { %938 = vmatpush3.bf16.msra.mxu1 %v1072_v33 }
  0x8b   : > { %939 = vmatprep.subr.bf16.mxu1 %v1073_v45 }
  0x8c   : > { %533 = vmatpush1.bf16.msra.mxu0 %v1060_v20 }
  0x8e   : > { %940 = vmatpush3.bf16.msra.mxu1 %v1074_v46 }
  0x8f   : > { %941 = vmatprep.subr.bf16.mxu1 %v1075_v47 }
  0x92   : > { %942 = vmatpush3.bf16.msra.mxu1 %v1076_v48 }
  0xfc   : > { %v379_v2 = vpop.xlane.xlu0 %378 }
  0xfd   : > { %v381_v3 = vmul.f32 0.0078125, %v379_v2 }
  0xff   : > { %v1501_v4 = vsub.f32 %v377_v0, %v381_v3 }
 0x101   : > { %v383_v5 = vmul.f32 %v1501_v4, %v1501_v4 }
 0x103   : > { %384 = vadd.xlane.f32.xlu0 %v383_v5 }
 0x190   : > { %v385_v34 = vpop.xlane.xlu0 %384 }
 0x191   : > { %v386_v35 = vmul.f32 0.0078125, %v385_v34 }
 0x193   : > { %v387_v36 = vadd.f32 1e-06, %v386_v35 }
 0x195   : > { %1077 = vrsqrt.f32 %v387_v36 }
 0x19f   : > { %v1078_v37 = vpop.eup %1077 }
 0x1a0   : > { %v389_v39 = vmul.f32 %v1078_v37, %v1501_v4  ;;  %v922_v4 = vld [vmem:[%s1579_s6] ss:$0 sm:$0xff] }
 0x1a2   : > { %v397_v41 = vmul.f32 %v888_v38, %v389_v39 }
 0x1a4   : > { %v405_v42 = vadd.f32 %v889_v40, %v397_v41 }
 0x1a6   : > { %v406_v43 = vpack.c.bf16 %v405_v42, %v405_v42 }
 0x1a8   : > { %407 = vst [vmem:[#allocation2] sm:$0xf] %v406_v43 }
 0x1af   : > { %v409_v44 = vld [vmem:[#allocation2] sm:$0xf] }
 0x1b0   : > { %551 = vmatmul.mubr.bf16.vlgmr.msra.gmra.mrb[0].mxu0 %v409_v44 }
 0x283   : > { %v552_v56 = vpop.f32.mrb[0].mxu0 }
 0x284   : > { %v553_v57 = vadd.f32 %v552_v56, %v431_v54  ;;  %v554_v58 = vpop.f32.mrb[1].mxu0 }
 0x285   : > { %v555_v59 = vadd.f32 %v554_v58, %v435_v55  ;;  %v556_v60 = vpop.f32.mrb[2].mxu0 }
 0x286   : > { %v559_v61 = vmax.f32 %v553_v57, 0.0  ;;  %v557_v62 = vpop.f32.mrb[3].mxu0 }
 0x287   : > { %v560_v63 = vmax.f32 %v555_v59, 0.0 }
 0x288   : > { %v562_v1 = vpack.c.bf16 %v559_v61, %v559_v61 }
 0x289   : > { %v563_v0 = vpack.c.bf16 %v560_v63, %v560_v63 }
 0x28b   : > { %724 = vmatprep.mubr.bf16.mxu1 %v563_v0 }
 0x28c   : > { %725 = vmatmul.mubr.bf16.vlgmr.msra.gmra.mrb[0].mxu1 %v562_v1 }
 0x35f   : > { %v943_v2 = vpop.f32.mrb[0].mxu1 }
 0x360   : > { %v944_v3 = vpop.f32.mrb[1].mxu1 }
 0x361   : > { %v945_v5 = vadd.f32 %v944_v3, %v943_v2  ;;  %v946_v6 = vpop.f32.mrb[2].mxu1 }
 0x362   : > { %v947_v7 = vpop.f32.mrb[3].mxu1 }
 0x363   : > { %v745_v8 = vadd.f32 %v945_v5, %v922_v4 }
 0x365   : > { %746 = vst [vmem:[%s364_s16] sm:$0xff] %v745_v8 }
 0x366   : > { %1178 = shalt.err (!%p1175_p11)
}
 0x367   : > { %s1179_s21 = scalar_lea.hbm %s1524_s9, 128  ;;  %s1183_s19 = scalar_lea.hbm %s1580_s7, 256 }
 0x368   : > { %p1180_p0 = scmp.ne.s32.totalorder %s1524_s9, %s1179_s21  ;;  %p1184_p6 = scmp.lt.u32.totalorder %s1524_s9, %s1580_s7 }
 0x369   : > { %p1185_p7 = scmp.lt.u32.totalorder %s1183_s19, %s1179_s21  ;;  %p1187_p8 = scmp.lt.u32.totalorder %s1179_s21, %s1524_s9 }
 0x36a   : > { %p1181_p4 = pnand %p1180_p0, %p1599_p12 }
 0x36b   : > { %p1186_p2 = por %p1185_p7, %p1184_p6 }
 0x36c   : > { %p1182_p13 = pneg %p1181_p4 }
 0x36d   : > { %p1188_p1 = por %p1187_p8, %p1186_p2 }
 0x36f   : > { %p1189_p10 = pnand %p1188_p1, %p1182_p13 }
 0x371   : > { %1192 = shalt.err (!%p1189_p10)
}
 0x372   : > { %959 = dma.vmem_to_hbm [thread:$0]  (%p1599_p12), %s1526_s18, 128, %s1524_s9, %s748_s11  }
 0x373 PF: > { %s1600_s16 = sld [smem:[#allocation14_spill]]  ;;  %s1601_s14 = sld [smem:[#allocation15_spill]] }
 0x374   : > { %p1603_p5 = scmp.ge.s32.totalorder %s1251_s29, 2 }
 0x379   : > { %s773_s15 = sand.u32 1, %s1600_s16   ;;  %p1602_p3 = scmp.ne.s32.totalorder %s1601_s14, 0 }
 0x37a   : > { %s774_s27 = scalar_lea.sflag [#allocation6], %s773_s15 }
 0x37b   : > { %p973_p9 = pnand %p1603_p5, %p1602_p3 }
 0x37d   : > { %1226 = dma.done.wait (!%p973_p9), %s774_s27, 128  }
 0x37e   : > { %1228 = vsyncadd (!%p973_p9), %s774_s27, 4294967168  ;;  %s24_s29 = sadd.s32 1, %s1251_s29   ;;  %s1604_s24 = smov %s1235_s25 }
 0x37f   : > { %p21_p11 = scmp.ge.s32.totalorder %s24_s29, 4   ;;  %s1605_s25 = smov %s1239_s26 }
 0x380   : > { %s1606_s26 = smov %s1444_s8  ;;  %s1607_s27 = smov %s1247_s28 }
 0x381   : > { %s1608_s28 = smov %s1610_s20  ;;  %23 = sbr.rel (!%p21_p11) target bundleno = 7 (0x7), region = 114 }
 0x388   :  { %779 = vsyncpa [#allocation5], 1 }
 0x389   :  { %781 = vsyncpa [#allocation5 + $0x1], 1 }
 0x38a   :  { %782 = vsyncpa [#allocation8], 1 }
 0x38b   :  { %783 = vsyncpa [#allocation6], 1 }
 0x38c   :  { %785 = vsyncpa [#allocation6 + $0x1], 1 }

</bundles_post_ra>
